<compile_context>
chip_gen: v7x
topology: tpu7x:2x2x1
jax: 0.10.0
libtpu: 0.0.40
codegen_flags: <defaults>
</compile_context>

<pallas_src>
import jax
import jax.numpy as jnp
from jax.experimental import pallas as pl
from jax.experimental.pallas import tpu as pltpu

_LANE = 128
_TARGET_BLOCK_BYTES = 4 * 1024 * 1024  # ~4 MiB per block (2 arrays x 2 bufs = 16 MiB)


def _identity_kernel(x_ref, o_ref):
    # Pure pass-through of the current (block_rows, width) tile.
    o_ref[...] = x_ref[...]


def _sublane_multiple(dtype) -> int:
    itemsize = jnp.dtype(dtype).itemsize
    return {4: 8, 2: 16, 1: 32}.get(itemsize, 8)


def _lane_dense_factorization(total, itemsize):
    """Pick (rows, width) with width a large multiple of 128 dividing total."""
    if total % _LANE != 0:
        return None
    width = _LANE
    # Widen the lane dim (power-of-two multiple of 128) up to a 64 KiB row so
    # stores stay unmasked and DMAs stay full-width.
    while total % (width * 2) == 0 and (width * 2) * itemsize <= 64 * 1024:
        width *= 2
    return total // width, width


def model_forward(x):
    """Forward of the (abstract) PyTorch `Model` base class.

    The reference forward() raises NotImplementedError, so the faithful
    forward pass is the identity.  Returning `x` directly is free (zero HBM
    read/write) and is the recommended path.
    """
    # TODO(synk): base-class forward() has no concrete math; identity only.
    return x


@jax.jit
def model_forward_pallas(x):
    """Identity forward as a lane-dense, input/output-aliased Pallas copy."""
    orig_shape = x.shape
    itemsize = jnp.dtype(x.dtype).itemsize
    total = x.size

    fact = _lane_dense_factorization(total, itemsize)
    if fact is None:
        # Rare fallback: element count not divisible by 128 -> single
        # full-extent block (fine for small tensors; guard for huge ones).
        rows, width = 1, total
        block_rows = 1
    else:
        rows, width = fact
        sub = _sublane_multiple(x.dtype)
        row_bytes = width * itemsize
        target_rows = max(sub, (_TARGET_BLOCK_BYTES // row_bytes) // sub * sub)
        block_rows = min(rows, target_rows)

    x2d = x.reshape(rows, width)  # contiguous reshape: free layout plumbing
    grid = (pl.cdiv(rows, block_rows),)

    y2d = pl.pallas_call(
        _identity_kernel,
        out_shape=jax.ShapeDtypeStruct((rows, width), x.dtype),
        grid=grid,
        in_specs=[pl.BlockSpec((block_rows, width), lambda i: (i, 0))],
        out_specs=pl.BlockSpec((block_rows, width), lambda i: (i, 0)),
        input_output_aliases={0: 0},
        compiler_params=pltpu.CompilerParams(
            dimension_semantics=("parallel",),
            vmem_limit_bytes=32 * 1024 * 1024,
        ),
    )(x2d)

    return y2d.reshape(orig_shape)


if __name__ == "__main__":
    key = jax.random.PRNGKey(0)
    # Small NCHW input consistent with a vision-style Model subclass.
    x = jax.random.normal(key, (2, 4, 16, 16), dtype=jnp.float32)

    # Recommended (free) path: pure pass-through.
    y_fast = model_forward(x)

    # Pallas kernel path: lane-dense aliased identity copy.
    y = model_forward_pallas(x)
    y = jax.block_until_ready(y)

    assert y.shape == x.shape and y.dtype == x.dtype
    assert bool(jnp.all(y == x))
    assert bool(jnp.all(y_fast == x))
    print("KERNEL_OK")
</pallas_src>

<mosaic_0001>
module attributes {stable_mosaic.version = 11 : i64} {
  func.func @_identity_kernel(%arg0: i32, %arg1: memref<1x2048xf32, #tpu.memory_space<vmem>>, %arg2: memref<1x2048xf32, #tpu.memory_space<vmem>>) attributes {dimension_semantics = [#tpu.dimension_semantics<parallel>], iteration_bounds = array<i64: 1>, scalar_prefetch = 0 : i64, scratch_operands = 0 : i64, tpu.core_type = #tpu.core_type<tc>, window_params = [{transform_indices = @transform_0, window_bounds = array<i64: 1, 2048>}, {transform_indices = @transform_1, window_bounds = array<i64: 1, 2048>}]} {
    %c0 = arith.constant 0 : index
    %c0_0 = arith.constant 0 : index
    %0 = vector.load %arg1[%c0, %c0_0] : memref<1x2048xf32, #tpu.memory_space<vmem>>, vector<1x2048xf32>
    %c0_1 = arith.constant 0 : index
    %c0_2 = arith.constant 0 : index
    %1 = vector.load %arg2[%c0_1, %c0_2] : memref<1x2048xf32, #tpu.memory_space<vmem>>, vector<1x2048xf32>
    tpu.vector_store %arg2[%c0_1, %c0_2], %0 {strides = array<i32>} : memref<1x2048xf32, #tpu.memory_space<vmem>>, vector<1x2048xf32>,
    return
  }
  func.func @transform_0(%arg0: i32) -> (i32, i32) {
    %c0_i32 = arith.constant 0 : i32
    %c0_i32_0 = arith.constant 0 : i32
    return %arg0, %c0_i32 : i32, i32
  }
  func.func @transform_1(%arg0: i32) -> (i32, i32) {
    %c0_i32 = arith.constant 0 : i32
    %c0_i32_0 = arith.constant 0 : i32
    return %arg0, %c0_i32 : i32, i32
  }
}

</mosaic_0001>

<bundles_post_ra>
// kernel: model_forward_pallas.1
= control target key start
LH: loop header
LB: loop body
LE: loop exit
PB: predicated region body
PF: predicated region fallthrough
CT: control target
= control target key end

     0   :  { %s38_s0 = inlined_call_operand.vmem [shape: f32[1,2048], index: 0, kind: input, shape index: {}, may-alias: {0,1}]   ;;  %s39_s1 = inlined_call_operand.vmem [shape: f32[1,2048], index: 1, kind: output, shape index: {}, may-alias: {0,1}]  }
   0x1   :  { %v8_v0 = vld [vmem:[%s38_s0] sm:$0xff]  ;;  %v9_v1 = vld [vmem:[%s38_s0 + $0x8] sm:$0xff] }
   0x2   :  { %10 = vst [vmem:[%s39_s1] sm:$0xff] %v8_v0  ;;  %11 = vst [vmem:[%s39_s1 + $0x8] sm:$0xff] %v9_v1 }

</bundles_post_ra>
